<compile_context>
chip_gen: v5e
topology: v5e:2x2
jax: 0.10.0
libtpu: 0.0.40
codegen_flags: <defaults>
</compile_context>

<pallas_src>
import functools

import jax
import jax.numpy as jnp
from jax.experimental import pallas as pl
from jax.experimental.pallas import tpu as pltpu


def _round_up(x, m):
    return (x + m - 1) // m * m


def fm_kernel(w0_ref, x_ref, bt_ref, st_ref, o_ref):
    # x : (TILE_N, d) f32 tile of the input
    # bt: (k+1, d)    f32  = concat([v, w[:, None]], axis=1).T   (grid-resident)
    # st: (1, d)      f32  = rowsum(v*v) as a row                (grid-resident)
    # w0: (1, 1)      f32 scalar in SMEM
    # o : (1, TILE_N) f32 lane-dense output row for this tile
    x = x_ref[...]
    bt = bt_ref[...]
    st = st_ref[...]
    w0 = w0_ref[0, 0]
    k = bt.shape[0] - 1

    # xb[c, n] = sum_d bt[c, d] * x[n, d]   -> (k+1, TILE_N)   (MXU pass 1)
    xb = jax.lax.dot_general(
        bt, x, (((1,), (1,)), ((), ())), preferred_element_type=jnp.float32)
    xv = xb[:k, :]          # (k, TILE_N)  = (x @ v).T
    lin = xb[k:k + 1, :]    # (1, TILE_N)  = (x @ w) laid out on lanes

    # out_2 = (x*x) @ rowsum(v*v), transposed -> (1, TILE_N)    (MXU pass 2)
    out2 = jax.lax.dot_general(
        st, x * x, (((1,), (1,)), ((), ())), preferred_element_type=jnp.float32)
    # out_1 = sum_k (x @ v)_k^2 : single sublane reduce -> (1, TILE_N)
    out1 = jnp.sum(xv * xv, axis=0, keepdims=True)

    o_ref[...] = (lin + w0 + 0.5 * (out1 - out2)).astype(o_ref.dtype)


@functools.partial(jax.jit, static_argnames=("tile_n",))
def torch_fm_forward(x, v, w, w0, *, tile_n=512):
    """FM forward. x: (N, d), v: (d, k), w: (d,), w0: scalar -> (N,) f32."""
    n, d = x.shape
    k = v.shape[1]

    x = x.astype(jnp.float32)
    v = v.astype(jnp.float32)
    w = w.astype(jnp.float32)

    # Keep the tile a multiple of 128 (lane-dense output row) and no larger
    # than needed; 512 double-buffered rows stay well inside scoped VMEM on
    # v5e / v6e / v7x for moderate d.
    tile_n = max(128, min(tile_n, _round_up(n, 128)))
    tile_n = _round_up(tile_n, 128)
    n_pad = _round_up(n, tile_n)
    num_tiles = n_pad // tile_n
    if n_pad != n:
        # Zero rows produce w0 and are sliced off below.
        x = jnp.pad(x, ((0, n_pad - n), (0, 0)))

    bt = jnp.concatenate([v, w[:, None]], axis=1).T          # (k+1, d)
    st = jnp.sum(v * v, axis=1)[None, :]                     # (1, d)
    w0_arr = jnp.asarray(w0, jnp.float32).reshape(1, 1)

    out = pl.pallas_call(
        fm_kernel,
        out_shape=jax.ShapeDtypeStruct((num_tiles, tile_n), jnp.float32),
        grid=(num_tiles,),
        in_specs=[
            pl.BlockSpec(memory_space=pltpu.SMEM),            # w0 scalar
            pl.BlockSpec((tile_n, d), lambda i: (i, 0)),      # x tile (pipelined)
            pl.BlockSpec((k + 1, d), lambda i: (0, 0)),       # [v | w].T resident
            pl.BlockSpec((1, d), lambda i: (0, 0)),           # rowsum(v^2) resident
        ],
        out_specs=pl.BlockSpec((1, tile_n), lambda i: (i, 0)),
        compiler_params=pltpu.CompilerParams(
            dimension_semantics=("parallel",)),
        cost_estimate=pl.CostEstimate(
            flops=2 * n_pad * d * (k + 2) + 4 * n_pad * (k + 2),
            transcendentals=0,
            bytes_accessed=(n_pad * d + n_pad + (k + 2) * d) * 4),
    )(w0_arr, x, bt, st)
    return out.reshape(n_pad)[:n]


def fm_reference(x, v, w, w0):
    out_linear = x @ w + w0
    out_1 = jnp.sum((x @ v) ** 2, axis=1)
    out_2 = jnp.sum((x ** 2) @ (v ** 2), axis=1)
    return out_linear + 0.5 * (out_1 - out_2)


if __name__ == "__main__":
    key = jax.random.PRNGKey(0)
    kx, kv, kw, kw0, kx2 = jax.random.split(key, 5)

    # Small shapes consistent with the module: N data points of dim d, rank k.
    N, d, k = 8, 16, 8
    x = jax.random.normal(kx, (N, d), dtype=jnp.float32)
    v = jax.random.normal(kv, (d, k), dtype=jnp.float32)
    w = jax.random.normal(kw, (d,), dtype=jnp.float32)
    w0 = jax.random.normal(kw0, (), dtype=jnp.float32)

    y = jax.block_until_ready(torch_fm_forward(x, v, w, w0))
    y_ref = fm_reference(x, v, w, w0)
    assert y.shape == (N,)
    assert jnp.allclose(y, y_ref, rtol=1e-4, atol=1e-3), (y, y_ref)

    # Second, ragged case that exercises the grid (3 tiles of 128 + padding).
    N2 = 300
    x2 = jax.random.normal(kx2, (N2, d), dtype=jnp.float32)
    y2 = jax.block_until_ready(torch_fm_forward(x2, v, w, w0, tile_n=128))
    y2_ref = fm_reference(x2, v, w, w0)
    assert y2.shape == (N2,)
    assert jnp.allclose(y2, y2_ref, rtol=1e-4, atol=1e-3), (y2, y2_ref)

    print("KERNEL_OK")
</pallas_src>

<mosaic_0001>
module attributes {stable_mosaic.version = 11 : i64} {
  func.func @fm_kernel(%arg0: i32, %arg1: memref<1x1xf32, #tpu.memory_space<smem>>, %arg2: memref<128x16xf32, #tpu.memory_space<vmem>>, %arg3: memref<9x16xf32, #tpu.memory_space<vmem>>, %arg4: memref<1x16xf32, #tpu.memory_space<vmem>>, %arg5: memref<1x128xf32, #tpu.memory_space<vmem>>) attributes {dimension_semantics = [#tpu.dimension_semantics<parallel>], iteration_bounds = array<i64: 1>, scalar_prefetch = 0 : i64, scratch_operands = 0 : i64, tpu.core_type = #tpu.core_type<tc>, window_params = [{transform_indices = @transform_0, window_bounds = array<i64: 1, 1>}, {transform_indices = @transform_1, window_bounds = array<i64: 128, 16>}, {pipeline_mode = #tpu.pipeline_mode<synchronous>, transform_indices = @transform_2, window_bounds = array<i64: 9, 16>}, {pipeline_mode = #tpu.pipeline_mode<synchronous>, transform_indices = @transform_3, window_bounds = array<i64: 1, 16>}, {transform_indices = @transform_4, window_bounds = array<i64: 1, 128>}]} {
    %c0 = arith.constant 0 : index
    %c0_0 = arith.constant 0 : index
    %0 = vector.load %arg2[%c0, %c0_0] : memref<128x16xf32, #tpu.memory_space<vmem>>, vector<128x16xf32>
    %c0_1 = arith.constant 0 : index
    %c0_2 = arith.constant 0 : index
    %1 = vector.load %arg3[%c0_1, %c0_2] : memref<9x16xf32, #tpu.memory_space<vmem>>, vector<9x16xf32>
    %c0_3 = arith.constant 0 : index
    %c0_4 = arith.constant 0 : index
    %2 = vector.load %arg4[%c0_3, %c0_4] : memref<1x16xf32, #tpu.memory_space<vmem>>, vector<1x16xf32>
    %c0_5 = arith.constant 0 : index
    %c0_6 = arith.constant 0 : index
    %3 = memref.load %arg1[%c0_5, %c0_6] : memref<1x1xf32, #tpu.memory_space<smem>>
    %cst = arith.constant dense<0.000000e+00> : vector<9x128xf32>
    %4 = tpu.matmul %1, %0, %cst {dimension_numbers = #tpu.dot_dimension_numbers<[1], [1], [0], [0], [0, 0, 1, 0], [], []>} : vector<9x16xf32>, vector<128x16xf32>, vector<9x128xf32> -> vector<9x128xf32>
    %5 = vector.extract_strided_slice %4 {offsets = [0, 0], sizes = [8, 128], strides = [1, 1]} : vector<9x128xf32> to vector<8x128xf32>
    %6 = vector.extract_strided_slice %4 {offsets = [8, 0], sizes = [1, 128], strides = [1, 1]} : vector<9x128xf32> to vector<1x128xf32>
    %7 = arith.mulf %0, %0 : vector<128x16xf32>
    %cst_7 = arith.constant dense<0.000000e+00> : vector<1x128xf32>
    %8 = tpu.matmul %2, %7, %cst_7 {dimension_numbers = #tpu.dot_dimension_numbers<[1], [1], [0], [0], [0, 0, 1, 0], [], []>} : vector<1x16xf32>, vector<128x16xf32>, vector<1x128xf32> -> vector<1x128xf32>
    %9 = arith.mulf %5, %5 : vector<8x128xf32>
    %cst_8 = arith.constant dense<0.000000e+00> : vector<128xf32>
    %10 = vector.multi_reduction <add>, %9, %cst_8 [0] : vector<8x128xf32> to vector<128xf32>
    %11 = vector.shape_cast %10 : vector<128xf32> to vector<1x128xf32>
    %12 = vector.broadcast %3 : f32 to vector<1x128xf32>
    %13 = arith.addf %6, %12 : vector<1x128xf32>
    %14 = arith.subf %11, %8 : vector<1x128xf32>
    %cst_9 = arith.constant 5.000000e-01 : f32
    %15 = vector.broadcast %cst_9 : f32 to vector<1x128xf32>
    %16 = arith.mulf %15, %14 : vector<1x128xf32>
    %17 = arith.addf %13, %16 : vector<1x128xf32>
    %c0_10 = arith.constant 0 : index
    %c0_11 = arith.constant 0 : index
    %18 = vector.load %arg5[%c0_10, %c0_11] : memref<1x128xf32, #tpu.memory_space<vmem>>, vector<1x128xf32>
    tpu.vector_store %arg5[%c0_10, %c0_11], %17 {strides = array<i32>} : memref<1x128xf32, #tpu.memory_space<vmem>>, vector<1x128xf32>,
    return
  }
  func.func @transform_0(%arg0: i32) -> (i32, i32) {
    %c0_i32 = arith.constant 0 : i32
    %c0_i32_0 = arith.constant 0 : i32
    %c0_i32_1 = arith.constant 0 : i32
    return %c0_i32, %c0_i32_0 : i32, i32
  }
  func.func @transform_1(%arg0: i32) -> (i32, i32) {
    %c0_i32 = arith.constant 0 : i32
    %c0_i32_0 = arith.constant 0 : i32
    return %arg0, %c0_i32 : i32, i32
  }
  func.func @transform_2(%arg0: i32) -> (i32, i32) {
    %c0_i32 = arith.constant 0 : i32
    %c0_i32_0 = arith.constant 0 : i32
    %c0_i32_1 = arith.constant 0 : i32
    return %c0_i32, %c0_i32_0 : i32, i32
  }
  func.func @transform_3(%arg0: i32) -> (i32, i32) {
    %c0_i32 = arith.constant 0 : i32
    %c0_i32_0 = arith.constant 0 : i32
    %c0_i32_1 = arith.constant 0 : i32
    return %c0_i32, %c0_i32_0 : i32, i32
  }
  func.func @transform_4(%arg0: i32) -> (i32, i32) {
    %c0_i32 = arith.constant 0 : i32
    %c0_i32_0 = arith.constant 0 : i32
    return %arg0, %c0_i32 : i32, i32
  }
}

</mosaic_0001>

<bundles_post_ra>
// kernel: torch_fm_forward.1
= control target key start
LH: loop header
LB: loop body
LE: loop exit
PB: predicated region body
PF: predicated region fallthrough
CT: control target
= control target key end

     0   :  { %vm38_vm0 = vcmask 130048   ;;  %s410_s1 = inlined_call_operand.vmem [shape: f32[128,16], index: 1, kind: input, shape index: {}]   ;;  %s411_s2 = inlined_call_operand.vmem [shape: f32[9,16], index: 2, kind: input, shape index: {}]   ;;  %s412_s3 = inlined_call_operand.vmem [shape: f32[1,16], index: 3, kind: input, shape index: {}]   ;;  %s413_s0 = inlined_call_operand.<no memory space> [shape: f32[1,1], index: 0, kind: input, shape index: {}]   ;;  %s414_s4 = inlined_call_operand.vmem [shape: f32[1,128], index: 4, kind: output, shape index: {}]  }
   0x1   :  { %v33_v0 = vld [vmem:[%s410_s1 + $0x78] sm:$0xff]  ;;  %v32_v2 = vld [vmem:[%s410_s1 + $0x70] sm:$0xff]  ;;  %v31_v4 = vld [vmem:[%s410_s1 + $0x68] sm:$0xff]  ;;  %v210_v44 = vstv %s413_s0 }
   0x2   :  { %220 = vmatpush.xpose.msk.msra.mxu0 %vm38_vm0, %v33_v0  ;;  %255 = vmatpush.xpose.msk.msra.mxu2 %vm38_vm0, %v33_v0  ;;  %v131_v1 = vmul.f32 %v33_v0, %v33_v0  ;;  %v130_v3 = vmul.f32 %v32_v2, %v32_v2  ;;  %v129_v5 = vmul.f32 %v31_v4, %v31_v4  ;;  %v30_v6 = vld [vmem:[%s410_s1 + $0x60] sm:$0xff]  ;;  %v29_v8 = vld [vmem:[%s410_s1 + $0x58] sm:$0xff]  ;;  %v28_v10 = vld [vmem:[%s410_s1 + $0x50] sm:$0xff] }
   0x3   :  { %v128_v7 = vmul.f32 %v30_v6, %v30_v6  ;;  %v127_v9 = vmul.f32 %v29_v8, %v29_v8  ;;  %v126_v11 = vmul.f32 %v28_v10, %v28_v10  ;;  %v27_v12 = vld [vmem:[%s410_s1 + $0x48] sm:$0xff]  ;;  %v26_v14 = vld [vmem:[%s410_s1 + $0x40] sm:$0xff]  ;;  %v25_v16 = vld [vmem:[%s410_s1 + $0x38] sm:$0xff] }
   0x4   :  { %238 = vmatpush.xpose.msk.msra.mxu1 %vm38_vm0, %v131_v1  ;;  %v125_v13 = vmul.f32 %v27_v12, %v27_v12  ;;  %v124_v15 = vmul.f32 %v26_v14, %v26_v14  ;;  %v123_v17 = vmul.f32 %v25_v16, %v25_v16  ;;  %v24_v18 = vld [vmem:[%s410_s1 + $0x30] sm:$0xff]  ;;  %v23_v20 = vld [vmem:[%s410_s1 + $0x28] sm:$0xff]  ;;  %v22_v22 = vld [vmem:[%s410_s1 + $0x20] sm:$0xff] }
   0x5   :  { %v122_v19 = vmul.f32 %v24_v18, %v24_v18  ;;  %v121_v21 = vmul.f32 %v23_v20, %v23_v20  ;;  %v120_v23 = vmul.f32 %v22_v22, %v22_v22  ;;  %v21_v24 = vld [vmem:[%s410_s1 + $0x18] sm:$0xff]  ;;  %v20_v26 = vld [vmem:[%s410_s1 + $0x10] sm:$0xff]  ;;  %v19_v28 = vld [vmem:[%s410_s1 + $0x8] sm:$0xff] }
   0x6   :  { %221 = vmatpush.xpose.msk.msra.mxu0 %vm38_vm0, %v32_v2  ;;  %256 = vmatpush.xpose.msk.msra.mxu2 %vm38_vm0, %v32_v2  ;;  %v119_v25 = vmul.f32 %v21_v24, %v21_v24  ;;  %v118_v27 = vmul.f32 %v20_v26, %v20_v26  ;;  %v117_v29 = vmul.f32 %v19_v28, %v19_v28  ;;  %v18_v30 = vld [vmem:[%s410_s1] sm:$0xff]  ;;  %v35_v33 = vld [vmem:[%s411_s2 + $0x8] sm:$0x1] }
   0x7   :  { %v116_v31 = vmul.f32 %v18_v30, %v18_v30  ;;  %v34_v32 = vld [vmem:[%s411_s2] sm:$0xff] }
   0x8   :  { %239 = vmatpush.xpose.msk.msra.mxu1 %vm38_vm0, %v130_v3  ;;  %v36_v34 = vld [vmem:[%s412_s3] sm:$0x1] }
   0xa   :  { %222 = vmatpush.xpose.msk.msra.mxu0 %vm38_vm0, %v31_v4  ;;  %257 = vmatpush.xpose.msk.msra.mxu2 %vm38_vm0, %v31_v4 }
   0xc   :  { %240 = vmatpush.xpose.msk.msra.mxu1 %vm38_vm0, %v129_v5 }
   0xe   :  { %223 = vmatpush.xpose.msk.msra.mxu0 %vm38_vm0, %v30_v6  ;;  %258 = vmatpush.xpose.msk.msra.mxu2 %vm38_vm0, %v30_v6 }
  0x10   :  { %241 = vmatpush.xpose.msk.msra.mxu1 %vm38_vm0, %v128_v7 }
  0x12   :  { %224 = vmatpush.xpose.msk.msra.mxu0 %vm38_vm0, %v29_v8  ;;  %259 = vmatpush.xpose.msk.msra.mxu2 %vm38_vm0, %v29_v8 }
  0x14   :  { %242 = vmatpush.xpose.msk.msra.mxu1 %vm38_vm0, %v127_v9 }
  0x16   :  { %225 = vmatpush.xpose.msk.msra.mxu0 %vm38_vm0, %v28_v10  ;;  %260 = vmatpush.xpose.msk.msra.mxu2 %vm38_vm0, %v28_v10 }
  0x18   :  { %243 = vmatpush.xpose.msk.msra.mxu1 %vm38_vm0, %v126_v11 }
  0x1a   :  { %226 = vmatpush.xpose.msk.msra.mxu0 %vm38_vm0, %v27_v12  ;;  %261 = vmatpush.xpose.msk.msra.mxu2 %vm38_vm0, %v27_v12 }
  0x1c   :  { %244 = vmatpush.xpose.msk.msra.mxu1 %vm38_vm0, %v125_v13 }
  0x1e   :  { %227 = vmatpush.xpose.msk.msra.mxu0 %vm38_vm0, %v26_v14  ;;  %262 = vmatpush.xpose.msk.msra.mxu2 %vm38_vm0, %v26_v14 }
  0x20   :  { %245 = vmatpush.xpose.msk.msra.mxu1 %vm38_vm0, %v124_v15 }
  0x22   :  { %228 = vmatpush.xpose.msk.msra.mxu0 %vm38_vm0, %v25_v16  ;;  %263 = vmatpush.xpose.msk.msra.mxu2 %vm38_vm0, %v25_v16 }
  0x24   :  { %246 = vmatpush.xpose.msk.msra.mxu1 %vm38_vm0, %v123_v17 }
  0x26   :  { %229 = vmatpush.xpose.msk.msra.mxu0 %vm38_vm0, %v24_v18  ;;  %264 = vmatpush.xpose.msk.msra.mxu2 %vm38_vm0, %v24_v18 }
  0x28   :  { %247 = vmatpush.xpose.msk.msra.mxu1 %vm38_vm0, %v122_v19 }
  0x2a   :  { %230 = vmatpush.xpose.msk.msra.mxu0 %vm38_vm0, %v23_v20  ;;  %265 = vmatpush.xpose.msk.msra.mxu2 %vm38_vm0, %v23_v20 }
  0x2c   :  { %248 = vmatpush.xpose.msk.msra.mxu1 %vm38_vm0, %v121_v21 }
  0x2e   :  { %231 = vmatpush.xpose.msk.msra.mxu0 %vm38_vm0, %v22_v22  ;;  %266 = vmatpush.xpose.msk.msra.mxu2 %vm38_vm0, %v22_v22 }
  0x30   :  { %249 = vmatpush.xpose.msk.msra.mxu1 %vm38_vm0, %v120_v23 }
  0x32   :  { %232 = vmatpush.xpose.msk.msra.mxu0 %vm38_vm0, %v21_v24  ;;  %267 = vmatpush.xpose.msk.msra.mxu2 %vm38_vm0, %v21_v24 }
  0x34   :  { %250 = vmatpush.xpose.msk.msra.mxu1 %vm38_vm0, %v119_v25 }
  0x36   :  { %233 = vmatpush.xpose.msk.msra.mxu0 %vm38_vm0, %v20_v26  ;;  %268 = vmatpush.xpose.msk.msra.mxu2 %vm38_vm0, %v20_v26 }
  0x38   :  { %251 = vmatpush.xpose.msk.msra.mxu1 %vm38_vm0, %v118_v27 }
  0x3a   :  { %234 = vmatpush.xpose.msk.msra.mxu0 %vm38_vm0, %v19_v28  ;;  %269 = vmatpush.xpose.msk.msra.mxu2 %vm38_vm0, %v19_v28 }
  0x3c   :  { %252 = vmatpush.xpose.msk.msra.mxu1 %vm38_vm0, %v117_v29 }
  0x3e   :  { %235 = vmatpush.xpose.msk.msra.mxu0 %vm38_vm0, %v18_v30  ;;  %270 = vmatpush.xpose.msk.msra.mxu2 %vm38_vm0, %v18_v30 }
  0x40   :  { %253 = vmatpush.xpose.msk.msra.mxu1 %vm38_vm0, %v116_v31 }
  0x41   :  { %236 = vmatmul.msk.f32.vlgmr.msra.gmra.mxu0 %vm38_vm0, %v34_v32  ;;  %237 = vmatmul.msk.f32.vlgmr.msra.gmra.mxu2 %vm38_vm0, %v35_v33 }
  0x43   :  { %254 = vmatmul.msk.f32.vlgmr.msra.gmra.mxu1 %vm38_vm0, %v36_v34 }
  0xbe   :  { %v110_v35 = vpop.f32.mrf.mxu0 }
  0xbf   :  { %v203_v36 = vmul.f32 %v110_v35, %v110_v35 }
  0xc0   :  { %v200_v42 = vpop.f32.mrf.mxu1 }
  0xc1   :  { %v204_v37 = vrot.slane %v203_v36, 4 }
  0xc3   :  { %v205_v38 = vadd.f32 %v204_v37, %v203_v36 }
  0xc4   :  { %v113_v43 = vpop.f32.mrf.mxu2 }
  0xc5   :  { %v206_v39 = vrot.slane %v205_v38, 2  ;;  %v211_v47 = vadd.f32 %v210_v44, %v113_v43 }
  0xc7   :  { %v207_v40 = vadd.f32 %v206_v39, %v205_v38 }
  0xc9   :  { %v208_v41 = vrot.slane %v207_v40, 1 }
  0xcb   :  { %v209_v45 = vadd.f32 %v208_v41, %v207_v40 }
  0xcd   :  { %v212_v46 = vsub.f32 %v209_v45, %v200_v42 }
  0xcf   :  { %v213_v48 = vmul.f32 0.5, %v212_v46 }
  0xd1   :  { %v214_v49 = vadd.f32 %v213_v48, %v211_v47 }
  0xd3   :  { %215 = vst [vmem:[%s414_s4] sm:$0x1] %v214_v49 }

</bundles_post_ra>
